<compile_context>
chip_gen: v7x
topology: tpu7x:2x2x1
jax: 0.10.0
libtpu: 0.0.40
codegen_flags: <defaults>
</compile_context>

<pallas_src>
import functools

import jax
import jax.numpy as jnp
from jax import lax
from jax.experimental import pallas as pl
from jax.experimental.pallas import tpu as pltpu


def _round_up(n, m):
    return ((n + m - 1) // m) * m


def _layernorm(y, a, b, *, eps, d_real):
    """Exact PyTorch LayerNorm-module semantics on (possibly lane-padded) rows.

    mean over the real feature dim, unbiased std (torch.std default, divide by
    D-1), eps added to std (not var):  a * (y - mean) / (std + eps) + b.
    Padded feature columns (>= d_real) hold exact zeros in y / a / b.
    """
    d_pad = y.shape[-1]
    mean = jnp.sum(y, axis=-1, keepdims=True) * (1.0 / d_real)
    xc = y - mean
    if d_pad != d_real:
        col = lax.broadcasted_iota(jnp.int32, y.shape, dimension=y.ndim - 1)
        xc = jnp.where(col < d_real, xc, 0.0)          # mask pad lanes out of stats
    var = jnp.sum(xc * xc, axis=-1, keepdims=True) * (1.0 / (d_real - 1))
    std = jnp.sqrt(var)
    inv = pl.reciprocal(std + eps, approx=False)       # exact: parity with torch divide
    return a * xc * inv + b


def _encoder_resident_kernel(x_ref, w_ref, bias_ref, a_ref, b_ref, o_ref, *,
                             eps, d_real, n_layers, compute_dtype):
    """Grid = (row_tiles,).  Whole weight stack resident in VMEM.

    x_ref:    (TM, Dp)             input rows
    w_ref:    (n_layers, Dp, Dp)   weight stack (compute dtype), constant block index
    bias_ref: (n_layers, 1, Dp)    biases (f32)
    a_ref:    (1, Dp)              LayerNorm gain
    b_ref:    (1, Dp)              LayerNorm bias
    o_ref:    (TM, Dp)             output rows
    """
    y = x_ref[...].astype(jnp.float32)
    for l in range(n_layers):                 # static unroll; w_ref[l] is a static slice
        xw = jnp.dot(y.astype(compute_dtype), w_ref[l],
                     preferred_element_type=jnp.float32)
        y = y + xw + bias_ref[l]
    o_ref[...] = _layernorm(y, a_ref[...], b_ref[...], eps=eps,
                            d_real=d_real).astype(o_ref.dtype)


def _encoder_streamed_kernel(x_ref, w_ref, bias_ref, a_ref, b_ref, o_ref, *,
                             eps, d_real, compute_dtype):
    """Grid = (row_tiles, n_layers).  One layer's weights resident per step; the
    activation is carried in the resident output block (P3 accumulator).

    x_ref:    (TM, Dp)   input rows (read only at l == 0)
    w_ref:    (Dp, Dp)   layer-l weights (leading layer dim squeezed)
    bias_ref: (1, Dp)    layer-l bias (leading layer dim squeezed)
    o_ref:    (TM, Dp)   resident f32 output block, doubles as the accumulator
    """
    l = pl.program_id(1)
    n_l = pl.num_programs(1)

    @pl.when(l == 0)
    def _():
        o_ref[...] = x_ref[...]

    y = o_ref[...]                                         # f32 resident accumulator
    xw = jnp.dot(y.astype(compute_dtype), w_ref[...],
                 preferred_element_type=jnp.float32)
    o_ref[...] = y + xw + bias_ref[...]

    @pl.when(l == n_l - 1)
    def _():
        o_ref[...] = _layernorm(o_ref[...], a_ref[...], b_ref[...], eps=eps,
                                d_real=d_real).astype(o_ref.dtype)


def _vmem_cap_bytes():
    """Physical VMEM minus headroom for Mosaic internal scratch."""
    try:
        phys = pltpu.get_tpu_info().vmem_capacity_bytes
    except Exception:
        phys = 64 * 1024 * 1024          # assume v7x per-TC (smallest generation)
    return max(phys - 8 * 1024 * 1024, 16 * 1024 * 1024)


def encoder_forward(x, mask, params, *, eps=1e-6, row_tile=256,
                    compute_dtype=jnp.bfloat16, weights_resident=None):
    """x: (B, S, D) float32.  `mask` would be consumed by the real EncoderLayer."""
    del mask  # consumed only inside the (external) real EncoderLayer
    B, S, D = x.shape
    w, bias, a, b = params                  # (n,D,D), (n,1,D), (1,D), (1,D)
    n_layers = w.shape[0]

    # --- lane-dense feature dim: pad D to a multiple of 128 ---
    Dp = _round_up(D, 128)
    pad_d = Dp - D

    R = B * S
    x2 = x.reshape(R, D)
    if pad_d:
        x2 = jnp.pad(x2, ((0, 0), (0, pad_d)))
        w = jnp.pad(w, ((0, 0), (0, pad_d), (0, pad_d)))
        bias = jnp.pad(bias, ((0, 0), (0, 0), (0, pad_d)))
        a = jnp.pad(a, ((0, 0), (0, pad_d)))
        b = jnp.pad(b, ((0, 0), (0, pad_d)))
    w_c = w.astype(compute_dtype)           # bf16 MXU inputs, f32 accumulation
    wsize = jnp.dtype(compute_dtype).itemsize

    vmem_cap = _vmem_cap_bytes()

    def resident_bytes(tm):
        return (2 * tm * Dp * 4                         # x tiles (double-buffered)
                + 2 * tm * Dp * 4                       # out tiles
                + 2 * n_layers * Dp * Dp * wsize        # weight stack (2 bufs budgeted)
                + 2 * n_layers * Dp * 4                 # bias stack
                + 2 * 2 * Dp * 4)                       # LN a, b

    def streamed_bytes(tm, wbuf):
        return (2 * tm * Dp * 4 + 2 * tm * Dp * 4
                + wbuf * Dp * Dp * wsize
                + 2 * Dp * 4 + 2 * 2 * Dp * 4)

    tm_res = _round_up(min(row_tile, _round_up(R, 8)), 8)
    if weights_resident is None:
        weights_resident = resident_bytes(tm_res) <= vmem_cap

    if weights_resident:
        # ---------------- resident-weight path ----------------
        tm = tm_res
        R_pad = _round_up(R, tm)
        x2p = jnp.pad(x2, ((0, R_pad - R), (0, 0))) if R_pad != R else x2
        grid = (R_pad // tm,)

        flops = 2 * R_pad * Dp * Dp * n_layers
        bytes_accessed = (2 * R_pad * Dp * 4                     # x in + out
                          + n_layers * Dp * Dp * wsize           # weight stack, once
                          + n_layers * Dp * 4 + 2 * Dp * 4)
        cost = pl.CostEstimate(flops=flops, transcendentals=2 * R_pad,
                               bytes_accessed=bytes_accessed)
        vmem_limit = min(max(resident_bytes(tm) + (2 << 20), 4 << 20), vmem_cap)

        kernel = functools.partial(_encoder_resident_kernel, eps=eps, d_real=D,
                                   n_layers=n_layers, compute_dtype=compute_dtype)
        out2 = pl.pallas_call(
            kernel,
            out_shape=jax.ShapeDtypeStruct((R_pad, Dp), x.dtype),
            grid_spec=pltpu.PrefetchScalarGridSpec(
                num_scalar_prefetch=0,
                grid=grid,
                in_specs=[
                    pl.BlockSpec((tm, Dp), lambda i: (i, 0)),               # x rows
                    pl.BlockSpec((n_layers, Dp, Dp), lambda i: (0, 0, 0)),  # weight stack
                    pl.BlockSpec((n_layers, 1, Dp), lambda i: (0, 0, 0)),   # bias stack
                    pl.BlockSpec((1, Dp), lambda i: (0, 0)),                # LN gain a
                    pl.BlockSpec((1, Dp), lambda i: (0, 0)),                # LN bias b
                ],
                out_specs=pl.BlockSpec((tm, Dp), lambda i: (i, 0)),
            ),
            compiler_params=pltpu.CompilerParams(
                dimension_semantics=("parallel",),
                vmem_limit_bytes=vmem_limit,
            ),
            cost_estimate=cost,
        )(x2p, w_c, bias, a, b)
    else:
        # ---------------- layer-streamed fallback path ----------------
        # Bigger row tile so per-step intensity (tm flops/byte) clears the
        # v6e/v7x roofline crossover when weights must be re-streamed.
        tm = _round_up(min(max(row_tile, 512), _round_up(R, 8)), 8)
        wbuf = 3 if streamed_bytes(tm, 3) <= vmem_cap else 2
        # TODO(synk): for very large D where even a double-buffered (Dp, Dp) bf16
        # weight block exceeds VMEM, additionally tile the weight's output (N)
        # dimension with per-column bias.
        R_pad = _round_up(R, tm)
        x2p = jnp.pad(x2, ((0, R_pad - R), (0, 0))) if R_pad != R else x2
        grid = (R_pad // tm, n_layers)

        flops = 2 * R_pad * Dp * Dp * n_layers
        bytes_accessed = (2 * R_pad * Dp * 4
                          + (R_pad // tm) * n_layers * (Dp * Dp * wsize + Dp * 4)
                          + 2 * Dp * 4)
        cost = pl.CostEstimate(flops=flops, transcendentals=2 * R_pad,
                               bytes_accessed=bytes_accessed)
        vmem_limit = min(max(streamed_bytes(tm, wbuf) + (2 << 20), 4 << 20), vmem_cap)

        try:   # deeper weight pipelining hides exposed DMA when HBM-bound
            w_spec = pl.BlockSpec((None, Dp, Dp), lambda i, l: (l, 0, 0),
                                  pipeline_mode=pl.Buffered(wbuf))
        except (TypeError, AttributeError):
            w_spec = pl.BlockSpec((None, Dp, Dp), lambda i, l: (l, 0, 0))

        kernel = functools.partial(_encoder_streamed_kernel, eps=eps, d_real=D,
                                   compute_dtype=compute_dtype)
        out2 = pl.pallas_call(
            kernel,
            out_shape=jax.ShapeDtypeStruct((R_pad, Dp), x.dtype),
            grid_spec=pltpu.PrefetchScalarGridSpec(
                num_scalar_prefetch=0,
                grid=grid,
                in_specs=[
                    pl.BlockSpec((tm, Dp), lambda i, l: (i, 0)),            # x rows
                    w_spec,                                                 # layer-l W
                    pl.BlockSpec((None, 1, Dp), lambda i, l: (l, 0, 0)),    # layer-l bias
                    pl.BlockSpec((1, Dp), lambda i, l: (0, 0)),             # LN gain a
                    pl.BlockSpec((1, Dp), lambda i, l: (0, 0)),             # LN bias b
                ],
                out_specs=pl.BlockSpec((tm, Dp), lambda i, l: (i, 0)),      # resident acc
            ),
            compiler_params=pltpu.CompilerParams(
                dimension_semantics=("parallel", "arbitrary"),
                vmem_limit_bytes=vmem_limit,
            ),
            cost_estimate=cost,
        )(x2p, w_c, bias, a, b)

    out2 = out2[:R, :D]
    return out2.reshape(B, S, D)


def encoder_reference(x, params, eps=1e-6, compute_dtype=jnp.bfloat16):
    """Pure-JAX reference mirroring the kernel math (stand-in layers, bf16 MXU inputs)."""
    w, bias, a, b = params
    B, S, D = x.shape
    y = x.astype(jnp.float32).reshape(B * S, D)
    for l in range(w.shape[0]):
        y = y + jnp.dot(y.astype(compute_dtype), w[l].astype(compute_dtype),
                        preferred_element_type=jnp.float32) + bias[l]
    mean = jnp.mean(y, axis=-1, keepdims=True)
    xc = y - mean
    var = jnp.sum(xc * xc, axis=-1, keepdims=True) / (D - 1)
    std = jnp.sqrt(var)
    out = a * xc / (std + eps) + b
    return out.reshape(B, S, D)


if __name__ == "__main__":
    key = jax.random.PRNGKey(0)
    B, S, D = 2, 8, 32          # batch, seq, model size (layer.size)
    N_LAYERS = 2

    k_x, k_w, k_b = jax.random.split(key, 3)
    x = jax.random.normal(k_x, (B, S, D), dtype=jnp.float32)
    # mask: (B, 1, S) boolean — passed through (consumed only by the real layer)
    mask = jnp.ones((B, 1, S), dtype=jnp.bool_)

    # Deterministic parameter init
    w = 0.05 * jax.random.normal(k_w, (N_LAYERS, D, D), dtype=jnp.float32)
    bias = 0.01 * jax.random.normal(k_b, (N_LAYERS, 1, D), dtype=jnp.float32)
    a = jnp.ones((1, D), dtype=jnp.float32)    # LayerNorm.a  (torch.ones(features))
    b = jnp.zeros((1, D), dtype=jnp.float32)   # LayerNorm.b  (torch.zeros(features))
    params = (w, bias, a, b)

    ref = encoder_reference(x, params)

    # Primary path: weight stack resident in VMEM (grid over rows only).
    out_res = jax.block_until_ready(encoder_forward(x, mask, params))
    assert out_res.shape == (B, S, D)
    assert jnp.allclose(out_res, ref, atol=5e-3, rtol=5e-3), "resident path mismatch"

    # Fallback path: layer-streamed weights with resident output accumulator.
    out_str = jax.block_until_ready(
        encoder_forward(x, mask, params, weights_resident=False))
    assert out_str.shape == (B, S, D)
    assert jnp.allclose(out_str, ref, atol=5e-3, rtol=5e-3), "streamed path mismatch"

    print("KERNEL_OK")
</pallas_src>

<mosaic_0001>
module attributes {stable_mosaic.version = 11 : i64} {
  func.func @_encoder_resident_kernel(%arg0: i32, %arg1: memref<16x128xf32, #tpu.memory_space<vmem>>, %arg2: memref<2x128x128xbf16, #tpu.memory_space<vmem>>, %arg3: memref<2x1x128xf32, #tpu.memory_space<vmem>>, %arg4: memref<1x128xf32, #tpu.memory_space<vmem>>, %arg5: memref<1x128xf32, #tpu.memory_space<vmem>>, %arg6: memref<16x128xf32, #tpu.memory_space<vmem>>) attributes {dimension_semantics = [#tpu.dimension_semantics<parallel>], iteration_bounds = array<i64: 1>, scalar_prefetch = 0 : i64, scratch_operands = 0 : i64, tpu.core_type = #tpu.core_type<tc>, window_params = [{transform_indices = @transform_0, window_bounds = array<i64: 16, 128>}, {pipeline_mode = #tpu.pipeline_mode<synchronous>, transform_indices = @transform_1, window_bounds = array<i64: 2, 128, 128>}, {pipeline_mode = #tpu.pipeline_mode<synchronous>, transform_indices = @transform_2, window_bounds = array<i64: 2, 1, 128>}, {pipeline_mode = #tpu.pipeline_mode<synchronous>, transform_indices = @transform_3, window_bounds = array<i64: 1, 128>}, {pipeline_mode = #tpu.pipeline_mode<synchronous>, transform_indices = @transform_4, window_bounds = array<i64: 1, 128>}, {transform_indices = @transform_5, window_bounds = array<i64: 16, 128>}]} {
    %c0 = arith.constant 0 : index
    %c0_0 = arith.constant 0 : index
    %0 = vector.load %arg1[%c0, %c0_0] : memref<16x128xf32, #tpu.memory_space<vmem>>, vector<16x128xf32>
    %1 = arith.truncf %0 : vector<16x128xf32> to vector<16x128xbf16>
    %c0_1 = arith.constant 0 : index
    %c0_2 = arith.constant 0 : index
    %c0_3 = arith.constant 0 : index
    %2 = vector.load %arg2[%c0_1, %c0_2, %c0_3] : memref<2x128x128xbf16, #tpu.memory_space<vmem>>, vector<1x128x128xbf16>
    %3 = vector.shape_cast %2 : vector<1x128x128xbf16> to vector<128x128xbf16>
    %cst = arith.constant dense<0.000000e+00> : vector<16x128xf32>
    %4 = tpu.matmul %1, %3, %cst {dimension_numbers = #tpu.dot_dimension_numbers<[1], [0], [0], [1], [0, 0, 1, 1], [], []>} : vector<16x128xbf16>, vector<128x128xbf16>, vector<16x128xf32> -> vector<16x128xf32>
    %5 = arith.addf %0, %4 : vector<16x128xf32>
    %c0_4 = arith.constant 0 : index
    %c0_5 = arith.constant 0 : index
    %c0_6 = arith.constant 0 : index
    %6 = vector.load %arg3[%c0_4, %c0_5, %c0_6] : memref<2x1x128xf32, #tpu.memory_space<vmem>>, vector<1x1x128xf32>
    %7 = vector.shape_cast %6 : vector<1x1x128xf32> to vector<1x128xf32>
    %8 = vector.broadcast %7 : vector<1x128xf32> to vector<16x128xf32>
    %9 = arith.addf %5, %8 : vector<16x128xf32>
    %10 = arith.truncf %9 : vector<16x128xf32> to vector<16x128xbf16>
    %c1 = arith.constant 1 : index
    %c0_7 = arith.constant 0 : index
    %c0_8 = arith.constant 0 : index
    %11 = vector.load %arg2[%c1, %c0_7, %c0_8] : memref<2x128x128xbf16, #tpu.memory_space<vmem>>, vector<1x128x128xbf16>
    %12 = vector.shape_cast %11 : vector<1x128x128xbf16> to vector<128x128xbf16>
    %cst_9 = arith.constant dense<0.000000e+00> : vector<16x128xf32>
    %13 = tpu.matmul %10, %12, %cst_9 {dimension_numbers = #tpu.dot_dimension_numbers<[1], [0], [0], [1], [0, 0, 1, 1], [], []>} : vector<16x128xbf16>, vector<128x128xbf16>, vector<16x128xf32> -> vector<16x128xf32>
    %14 = arith.addf %9, %13 : vector<16x128xf32>
    %c1_10 = arith.constant 1 : index
    %c0_11 = arith.constant 0 : index
    %c0_12 = arith.constant 0 : index
    %15 = vector.load %arg3[%c1_10, %c0_11, %c0_12] : memref<2x1x128xf32, #tpu.memory_space<vmem>>, vector<1x1x128xf32>
    %16 = vector.shape_cast %15 : vector<1x1x128xf32> to vector<1x128xf32>
    %17 = vector.broadcast %16 : vector<1x128xf32> to vector<16x128xf32>
    %18 = arith.addf %14, %17 : vector<16x128xf32>
    %c0_13 = arith.constant 0 : index
    %c0_14 = arith.constant 0 : index
    %19 = vector.load %arg4[%c0_13, %c0_14] : memref<1x128xf32, #tpu.memory_space<vmem>>, vector<1x128xf32>
    %c0_15 = arith.constant 0 : index
    %c0_16 = arith.constant 0 : index
    %20 = vector.load %arg5[%c0_15, %c0_16] : memref<1x128xf32, #tpu.memory_space<vmem>>, vector<1x128xf32>
    %cst_17 = arith.constant dense<0.000000e+00> : vector<16xf32>
    %21 = vector.multi_reduction <add>, %18, %cst_17 [1] : vector<16x128xf32> to vector<16xf32>
    %22 = vector.shape_cast %21 : vector<16xf32> to vector<16x1xf32>
    %cst_18 = arith.constant 3.125000e-02 : f32
    %23 = vector.broadcast %cst_18 : f32 to vector<16x1xf32>
    %24 = arith.mulf %22, %23 : vector<16x1xf32>
    %25 = vector.broadcast %24 : vector<16x1xf32> to vector<16x128xf32>
    %26 = arith.subf %18, %25 : vector<16x128xf32>
    %27 = tpu.iota {dimensions = array<i32: 1>} : vector<16x128xi32>
    %c32_i32 = arith.constant 32 : i32
    %28 = vector.broadcast %c32_i32 : i32 to vector<16x128xi32>
    %29 = arith.cmpi slt, %27, %28 : vector<16x128xi32>
    %cst_19 = arith.constant 0.000000e+00 : f32
    %30 = vector.broadcast %cst_19 : f32 to vector<16x128xf32>
    %31 = arith.select %29, %26, %30 : vector<16x128xi1>, vector<16x128xf32>
    %32 = arith.mulf %31, %31 : vector<16x128xf32>
    %cst_20 = arith.constant dense<0.000000e+00> : vector<16xf32>
    %33 = vector.multi_reduction <add>, %32, %cst_20 [1] : vector<16x128xf32> to vector<16xf32>
    %34 = vector.shape_cast %33 : vector<16xf32> to vector<16x1xf32>
    %cst_21 = arith.constant 0.0322580636 : f32
    %35 = vector.broadcast %cst_21 : f32 to vector<16x1xf32>
    %36 = arith.mulf %34, %35 : vector<16x1xf32>
    %37 = math.sqrt %36 : vector<16x1xf32>
    %cst_22 = arith.constant 9.99999997E-7 : f32
    %38 = vector.broadcast %cst_22 : f32 to vector<16x1xf32>
    %39 = arith.addf %37, %38 : vector<16x1xf32>
    %40 = tpu.reciprocal %39 : vector<16x1xf32> -> vector<16x1xf32>
    %41 = vector.broadcast %19 : vector<1x128xf32> to vector<16x128xf32>
    %42 = arith.mulf %41, %31 : vector<16x128xf32>
    %43 = vector.broadcast %40 : vector<16x1xf32> to vector<16x128xf32>
    %44 = arith.mulf %42, %43 : vector<16x128xf32>
    %45 = vector.broadcast %20 : vector<1x128xf32> to vector<16x128xf32>
    %46 = arith.addf %44, %45 : vector<16x128xf32>
    %c0_23 = arith.constant 0 : index
    %c0_24 = arith.constant 0 : index
    %47 = vector.load %arg6[%c0_23, %c0_24] : memref<16x128xf32, #tpu.memory_space<vmem>>, vector<16x128xf32>
    tpu.vector_store %arg6[%c0_23, %c0_24], %46 {strides = array<i32>} : memref<16x128xf32, #tpu.memory_space<vmem>>, vector<16x128xf32>,
    return
  }
  func.func @transform_0(%arg0: i32) -> (i32, i32) {
    %c0_i32 = arith.constant 0 : i32
    %c0_i32_0 = arith.constant 0 : i32
    return %arg0, %c0_i32 : i32, i32
  }
  func.func @transform_1(%arg0: i32) -> (i32, i32, i32) {
    %c0_i32 = arith.constant 0 : i32
    %c0_i32_0 = arith.constant 0 : i32
    %c0_i32_1 = arith.constant 0 : i32
    %c0_i32_2 = arith.constant 0 : i32
    return %c0_i32, %c0_i32_0, %c0_i32_1 : i32, i32, i32
  }
  func.func @transform_2(%arg0: i32) -> (i32, i32, i32) {
    %c0_i32 = arith.constant 0 : i32
    %c0_i32_0 = arith.constant 0 : i32
    %c0_i32_1 = arith.constant 0 : i32
    %c0_i32_2 = arith.constant 0 : i32
    return %c0_i32, %c0_i32_0, %c0_i32_1 : i32, i32, i32
  }
  func.func @transform_3(%arg0: i32) -> (i32, i32) {
    %c0_i32 = arith.constant 0 : i32
    %c0_i32_0 = arith.constant 0 : i32
    %c0_i32_1 = arith.constant 0 : i32
    return %c0_i32, %c0_i32_0 : i32, i32
  }
  func.func @transform_4(%arg0: i32) -> (i32, i32) {
    %c0_i32 = arith.constant 0 : i32
    %c0_i32_0 = arith.constant 0 : i32
    %c0_i32_1 = arith.constant 0 : i32
    return %c0_i32, %c0_i32_0 : i32, i32
  }
  func.func @transform_5(%arg0: i32) -> (i32, i32) {
    %c0_i32 = arith.constant 0 : i32
    %c0_i32_0 = arith.constant 0 : i32
    return %arg0, %c0_i32 : i32, i32
  }
}

</mosaic_0001>

<bundles_post_ra>
// kernel: tpu_custom_call.1
= control target key start
LH: loop header
LB: loop body
LE: loop exit
PB: predicated region body
PF: predicated region fallthrough
CT: control target
= control target key end

     0   :  { %10 = vsyncpa [#allocation3], 0  ;;  %s644_s0 = inlined_call_operand.hbm [shape: f32[16,128], index: 0, kind: input, shape index: {}]   ;;  %s645_s1 = inlined_call_operand.hbm [shape: bf16[2,128,128], index: 1, kind: input, shape index: {}]   ;;  %s646_s2 = inlined_call_operand.vmem [shape: f32[2,1,128], index: 2, kind: input, shape index: {}]   ;;  %s647_s3 = inlined_call_operand.vmem [shape: f32[1,128], index: 3, kind: input, shape index: {}]   ;;  %s648_s4 = inlined_call_operand.vmem [shape: f32[1,128], index: 4, kind: input, shape index: {}]   ;;  %s649_s5 = inlined_call_operand.hbm [shape: f32[16,128], index: 5, kind: output, shape index: {}]  }
   0x1   :  { %11 = vsyncpa [#allocation6], 0 }
   0x2   :  { %12 = vsyncpa [#allocation4], 0  ;;  %s551_s18 = smov [#allocation2]   ;;  %s479_s22 = scalar_lea.hbm %s644_s0, 256 }
   0x3   :  { %s18_s19 = sshll.u32 %s551_s18, 4  ;;  %p480_p0 = scmp.ne.s32.totalorder %s644_s0, %s479_s22  ;;  %s19_s19 = int_to_ptr.vmem [resolvable:$true] %s18_s19 }
   0x4   :  { %p483_p1 = scmp.lt.u32.totalorder %s479_s22, %s644_s0 }
   0x6   :  { %p485_p2 = pnand %p483_p1, %p480_p0 }
   0x8   :  { %488 = shalt.err (!%p485_p2)
}
   0x9   :  { %s489_s27 = scalar_lea.vmem %s19_s19, 256  ;;  %p494_p4 = scmp.lt.s32.totalorder %s19_s19, %s19_s19 }
   0xa   :  { %p490_p3 = scmp.ne.s32.totalorder %s19_s19, %s489_s27  ;;  %p495_p5 = scmp.lt.s32.totalorder %s489_s27, %s489_s27 }
   0xc   :  { %p496_p6 = por %p495_p5, %p494_p4 }
   0xe   :  { %p497_p7 = pnand %p496_p6, %p490_p3 }
  0x10   :  { %500 = shalt.err (!%p497_p7)
}
  0x11   :  { %s552_s28 = smov 128   ;;  %s553_s29 = smov 8  }
  0x12   :  { %24 = dma.hbm_to_vmem [thread:$0]  %s644_s0, 256, %s19_s19, [#allocation3], %s552_s28, %s552_s28, %s553_s29  }
  0x13   :  { %s554_s7 = smov [#allocation5]   ;;  %s501_s11 = scalar_lea.hbm %s645_s1, 2048 }
  0x14   :  { %s30_s8 = sshll.u32 %s554_s7, 4  ;;  %p502_p8 = scmp.ne.s32.totalorder %s645_s1, %s501_s11  ;;  %s31_s8 = int_to_ptr.vmem [resolvable:$true] %s30_s8 }
  0x15   :  { %p505_p9 = scmp.lt.u32.totalorder %s501_s11, %s645_s1 }
  0x17   :  { %p507_p10 = pnand %p505_p9, %p502_p8 }
  0x19   :  { %510 = shalt.err (!%p507_p10)
}
  0x1a   :  { %s511_s16 = scalar_lea.vmem %s31_s8, 2048  ;;  %p516_p12 = scmp.lt.s32.totalorder %s31_s8, %s31_s8 }
  0x1b   :  { %p512_p11 = scmp.ne.s32.totalorder %s31_s8, %s511_s16  ;;  %p517_p13 = scmp.lt.s32.totalorder %s511_s16, %s511_s16 }
  0x1d   :  { %p518_p0 = por %p517_p13, %p516_p12 }
  0x1f   :  { %p519_p1 = pnand %p518_p0, %p512_p11 }
  0x21   :  { %522 = shalt.err (!%p519_p1)
}
  0x22   :  { %s555_s0 = smov 64   ;;  %s556_s17 = smov 4  }
  0x23   :  { %36 = dma.hbm_to_vmem [thread:$0]  %s645_s1, 2048, %s31_s8, [#allocation6], %s555_s0, %s555_s0, %s556_s17  }
  0x24   :  { %545 = dma.done.wait [#allocation3], 256  }
  0x25   :  { %546 = vsyncadd [#allocation3], 4294967040 }
  0x26   :  { %547 = dma.done.wait [#allocation6], 2048  }
  0x27   :  { %548 = vsyncadd [#allocation6], 4294965248  ;;  %v557_v0 = vmov 0.0   ;;  %vm558_vm0 = vmmov 0   ;;  %v455_v1 = vld [vmem:[#allocation5] sm:$0xff]   ;;  %v456_v2 = vld [vmem:[#allocation5 + $0x8] sm:$0xff]   ;;  %v298_v39 = vlaneseq }
  0x28   :  { %406 = vmatprep.subr.bf16.mxu0 %v557_v0  ;;  %422 = vmatprep.mubr.msk.bf16.mxu0 %vm558_vm0, %v557_v0  ;;  %v457_v3 = vld [vmem:[#allocation5 + $0x10] sm:$0xff]   ;;  %v463_v4 = vld [vmem:[#allocation5 + $0x40] sm:$0xff]   ;;  %v458_v5 = vld [vmem:[#allocation5 + $0x18] sm:$0xff]   ;;  %s559_s26 = smov [#allocation7]  }
  0x29   :  { %426 = vmatprep.subr.bf16.mxu1 %v557_v0  ;;  %442 = vmatprep.mubr.msk.bf16.mxu1 %vm558_vm0, %v557_v0  ;;  %v464_v6 = vld [vmem:[#allocation5 + $0x48] sm:$0xff]   ;;  %v459_v7 = vld [vmem:[#allocation5 + $0x20] sm:$0xff]   ;;  %v465_v8 = vld [vmem:[#allocation5 + $0x50] sm:$0xff]   ;;  %v299_v40 = vand.u32 127, %v298_v39  ;;  %s354_s27 = sshll.u32 %s559_s26, 4  ;;  %s355_s27 = int_to_ptr.vmem [resolvable:$true] %s354_s27 }
  0x2a   :  { %407 = vmatpush3.bf16.msra.mxu0 %v455_v1  ;;  %427 = vmatpush3.bf16.msra.mxu1 %v463_v4  ;;  %v460_v9 = vld [vmem:[#allocation5 + $0x28] sm:$0xff]   ;;  %v466_v10 = vld [vmem:[#allocation5 + $0x58] sm:$0xff]   ;;  %v461_v11 = vld [vmem:[#allocation5 + $0x30] sm:$0xff]   ;;  %s523_s30 = scalar_lea.vmem %s355_s27, 256  ;;  %p528_p3 = scmp.lt.s32.totalorder %s355_s27, %s355_s27 }
  0x2b   :  { %408 = vmatprep.subr.bf16.mxu0 %v557_v0  ;;  %428 = vmatprep.subr.bf16.mxu1 %v557_v0  ;;  %v467_v12 = vld [vmem:[#allocation5 + $0x60] sm:$0xff]   ;;  %v462_v13 = vld [vmem:[#allocation5 + $0x38] sm:$0xff]   ;;  %v50_v14 = vld [vmem:[#allocation2] sm:$0xff]  ;;  %vm300_vm1 = vcmp.lt.s32.totalorder %v299_v40, 32  ;;  %p524_p2 = scmp.ne.s32.totalorder %s355_s27, %s523_s30  ;;  %p529_p4 = scmp.lt.s32.totalorder %s523_s30, %s523_s30 }
  0x2c   :  { %v51_v15 = vld [vmem:[#allocation2 + $0x8] sm:$0xff]  ;;  %v468_v16 = vld [vmem:[#allocation5 + $0x68] sm:$0xff]   ;;  %v469_v18 = vld [vmem:[#allocation5 + $0x70] sm:$0xff]  }
  0x2d   :  { %v52_v17 = vpack.c.bf16 %v51_v15, %v50_v14  ;;  %v470_v19 = vld [vmem:[#allocation5 + $0x78] sm:$0xff]   ;;  %v375_v23 = vld [vmem:[%s646_s2] ss:$0 sm:$0xff]  ;;  %v385_v31 = vld [vmem:[%s646_s2 + $0x1] ss:$0 sm:$0xff]  ;;  %p530_p5 = por %p529_p4, %p528_p3 }
  0x2e   :  { %409 = vmatpush3.bf16.msra.mxu0 %v456_v2  ;;  %429 = vmatpush3.bf16.msra.mxu1 %v464_v6  ;;  %v387_v6 = vld [vmem:[%s648_s4] ss:$0 sm:$0xff] }
  0x2f   :  { %410 = vmatprep.subr.bf16.mxu0 %v557_v0  ;;  %430 = vmatprep.subr.bf16.mxu1 %v557_v0  ;;  %p531_p6 = pnand %p530_p5, %p524_p2 }
  0x32   :  { %411 = vmatpush3.bf16.msra.mxu0 %v457_v3  ;;  %431 = vmatpush3.bf16.msra.mxu1 %v465_v8  ;;  %v386_v3 = vld [vmem:[%s647_s3] ss:$0 sm:$0xff] }
  0x33   :  { %412 = vmatprep.subr.bf16.mxu0 %v557_v0  ;;  %432 = vmatprep.subr.bf16.mxu1 %v557_v0 }
  0x36   :  { %413 = vmatpush3.bf16.msra.mxu0 %v458_v5  ;;  %433 = vmatpush3.bf16.msra.mxu1 %v466_v10 }
  0x37   :  { %414 = vmatprep.subr.bf16.mxu0 %v557_v0  ;;  %434 = vmatprep.subr.bf16.mxu1 %v557_v0 }
  0x3a   :  { %415 = vmatpush3.bf16.msra.mxu0 %v459_v7  ;;  %435 = vmatpush3.bf16.msra.mxu1 %v467_v12 }
  0x3b   :  { %416 = vmatprep.subr.bf16.mxu0 %v557_v0  ;;  %436 = vmatprep.subr.bf16.mxu1 %v557_v0 }
  0x3e   :  { %417 = vmatpush3.bf16.msra.mxu0 %v460_v9  ;;  %437 = vmatpush3.bf16.msra.mxu1 %v468_v16 }
  0x3f   :  { %418 = vmatprep.subr.bf16.mxu0 %v557_v0  ;;  %438 = vmatprep.subr.bf16.mxu1 %v557_v0 }
  0x42   :  { %419 = vmatpush3.bf16.msra.mxu0 %v461_v11  ;;  %439 = vmatpush3.bf16.msra.mxu1 %v469_v18 }
  0x43   :  { %420 = vmatprep.subr.bf16.mxu0 %v557_v0  ;;  %440 = vmatprep.subr.bf16.mxu1 %v557_v0 }
  0x46   :  { %421 = vmatpush3.bf16.msra.mxu0 %v462_v13  ;;  %441 = vmatpush3.bf16.msra.mxu1 %v470_v19 }
  0x49   :  { %423 = vmatmul.mubr.bf16.vlgmr.msra.gmra.mrb[0].mxu0 %v52_v17 }
 0x11c   :  { %v151_v20 = vpop.f32.mrb[0].mxu0 }
 0x11d   :  { %v158_v21 = vadd.f32 %v151_v20, %v50_v14  ;;  %v424_v22 = vpop.f32.mrb[1].mxu0 }
 0x11e   :  { %v154_v24 = vpop.f32.mrb[2].mxu0 }
 0x11f   :  { %v159_v25 = vadd.f32 %v154_v24, %v51_v15  ;;  %v425_v26 = vpop.f32.mrb[3].mxu0  ;;  %v167_v27 = vadd.f32 %v375_v23, %v158_v21 }
 0x121   :  { %v168_v28 = vadd.f32 %v375_v23, %v159_v25 }
 0x123   :  { %v169_v29 = vpack.c.bf16 %v168_v28, %v167_v27 }
 0x125   :  { %443 = vmatmul.mubr.bf16.vlgmr.msra.gmra.mrb[0].mxu1 %v169_v29 }
 0x1f8   :  { %v269_v30 = vpop.f32.mrb[0].mxu1 }
 0x1f9   :  { %v276_v32 = vadd.f32 %v269_v30, %v167_v27  ;;  %v444_v33 = vpop.f32.mrb[1].mxu1 }
 0x1fa   :  { %v272_v34 = vpop.f32.mrb[2].mxu1 }
 0x1fb   :  { %v277_v35 = vadd.f32 %v272_v34, %v168_v28  ;;  %v445_v36 = vpop.f32.mrb[3].mxu1  ;;  %v286_v37 = vadd.f32 %v385_v31, %v276_v32 }
 0x1fd   :  { %290 = vadd.xlane.f32.xlu0 %v286_v37  ;;  %v287_v38 = vadd.f32 %v385_v31, %v277_v35 }
 0x201   :  { %292 = vadd.xlane.f32.xlu0 %v287_v38 }
 0x28a   :  { %v291_v41 = vpop.xlane.xlu0 %290 }
 0x28b   :  { %v294_v42 = vmul.f32 0.03125, %v291_v41 }
 0x28d   :  { %v296_v43 = vsub.f32 %v286_v37, %v294_v42 }
 0x28e   :  { %v293_v44 = vpop.xlane.xlu0 %292 }
 0x28f   :  { %v295_v45 = vmul.f32 0.03125, %v293_v44  ;;  %v301_v46 = vsel %vm300_vm1, %v296_v43, 0.0 }
 0x290   :  { %v303_v47 = vmul.f32 %v301_v46, %v301_v46  ;;  %v335_v4 = vmul.f32 %v386_v3, %v301_v46 }
 0x291   :  { %v297_v48 = vsub.f32 %v287_v38, %v295_v45 }
 0x292   :  { %305 = vadd.xlane.f32.xlu1 %v303_v47 }
 0x293   :  { %v302_v49 = vsel %vm300_vm1, %v297_v48, 0.0 }
 0x294   :  { %v304_v50 = vmul.f32 %v302_v49, %v302_v49  ;;  %v336_v8 = vmul.f32 %v386_v3, %v302_v49 }
 0x296   :  { %307 = vadd.xlane.f32.xlu1 %v304_v50 }
 0x31f   :  { %v306_v51 = vpop.xlane.xlu1 %305 }
 0x320   :  { %v309_v52 = vmul.f32 0.032258064, %v306_v51 }
 0x322   :  { %471 = vrsqrt.f32 %v309_v52  ;;  %vm313_vm2 = vcmp.eq.f32.partialorder %v309_v52, inf  ;;  %v316_v57 = vand.u32 2147483648, %v309_v52  ;;  %vm315_vm3 = vcmp.eq.f32.partialorder %v309_v52, 0.0 }
 0x323   :  { %v308_v53 = vpop.xlane.xlu1 %307 }
 0x324   :  { %v310_v54 = vmul.f32 0.032258064, %v308_v53 }
 0x326   :  { %473 = vrsqrt.f32 %v310_v54  ;;  %vm320_vm4 = vcmp.eq.f32.partialorder %v310_v54, inf  ;;  %v323_v63 = vand.u32 2147483648, %v310_v54  ;;  %vm322_vm5 = vcmp.eq.f32.partialorder %v310_v54, 0.0 }
 0x32c   :  { %v472_v55 = vpop.eup %471 }
 0x32d   :  { %v312_v56 = vmul.f32 %v472_v55, %v309_v52 }
 0x32f   :  { %v314_v58 = vsel %vm313_vm2, %v309_v52, %v312_v56 }
 0x330   :  { %v474_v59 = vpop.eup %473  ;;  %v317_v60 = vsel %vm315_vm3, %v316_v57, %v314_v58 }
 0x331   :  { %v319_v61 = vmul.f32 %v474_v59, %v310_v54  ;;  %v325_v62 = vadd.f32 1e-06, %v317_v60 }
 0x333   :  { %v321_v0 = vsel %vm320_vm4, %v310_v54, %v319_v61  ;;  %475 = vrcp.f32 %v325_v62 }
 0x334   :  { %v324_v1 = vsel %vm322_vm5, %v323_v63, %v321_v0 }
 0x335   :  { %v326_v2 = vadd.f32 1e-06, %v324_v1 }
 0x337   :  { %477 = vrcp.f32 %v326_v2 }
 0x33d   :  { %v476_v5 = vpop.eup %475 }
 0x33e   :  { %v337_v7 = vmul.f32 %v476_v5, %v335_v4 }
 0x340   :  { %v345_v9 = vadd.f32 %v387_v6, %v337_v7 }
 0x341   :  { %v478_v10 = vpop.eup %477 }
 0x342   :  { %v338_v11 = vmul.f32 %v478_v10, %v336_v8  ;;  %347 = vst [vmem:[#allocation7] sm:$0xff] %v345_v9 }
 0x344   :  { %v346_v12 = vadd.f32 %v387_v6, %v338_v11 }
 0x346   :  { %348 = vst [vmem:[#allocation7 + $0x8] sm:$0xff] %v346_v12 }
 0x347   :  { %534 = shalt.err (!%p531_p6)
}
 0x348   :  { %s535_s6 = scalar_lea.hbm %s649_s5, 256 }
 0x349   :  { %p536_p7 = scmp.ne.s32.totalorder %s649_s5, %s535_s6  ;;  %p539_p8 = scmp.lt.u32.totalorder %s535_s6, %s649_s5 }
 0x34b   :  { %p541_p9 = pnand %p539_p8, %p536_p7 }
 0x34d   :  { %544 = shalt.err (!%p541_p9)
}
 0x34e   :  { %360 = dma.vmem_to_hbm [thread:$0]  %s355_s27, 256, %s649_s5, [#allocation4], %s552_s28, %s552_s28, %s553_s29  }
 0x34f   :  { %549 = dma.done.wait [#allocation4], 256  }
 0x350   :  { %550 = vsyncadd [#allocation4], 4294967040 }
 0x351   :  { %364 = vsyncpa [#allocation3], 1 }
 0x352   :  { %365 = vsyncpa [#allocation6], 1 }
 0x353   :  { %366 = vsyncpa [#allocation4], 1 }

</bundles_post_ra>
